<compile_context>
chip_gen: v7x
topology: tpu7x:2x2x1
jax: 0.10.0
libtpu: 0.0.40
codegen_flags: <defaults>
</compile_context>

<pallas_src>
import jax
import jax.numpy as jnp
from jax.experimental import pallas as pl
from jax.experimental.pallas import tpu as pltpu


def _round_up(n, m):
    return ((n + m - 1) // m) * m


def _vmem_cap(vmem_needed_bytes):
    """Requested limit + headroom, capped at physical VMEM - 8 MiB."""
    try:
        cap = pltpu.get_tpu_info().vmem_capacity_bytes
    except Exception:  # conservative fallback if the query is unavailable
        cap = 64 * 1024 * 1024
    return int(min(vmem_needed_bytes + (4 << 20), cap - (8 << 20)))


# ----------------------------------------------------------------------------
# Parameter prep (one-time, hoisted out of the per-step path)
# ----------------------------------------------------------------------------
def prepare_rnn_cell_params(w_i, b_i, w_h, b_h, *, compute_dtype=jnp.bfloat16):
    """Build the fused, pre-transposed, lane-padded weight with the recurrent
    block FIRST:
        W = [W_h^T ; W_i^T]  ->  (K_pad, N_pad),  K_pad = hc_pad + ic_pad
    so the in-kernel h' write-back lands at lane offset 0 (128-aligned,
    unmasked) and x[t] at lane offset hc_pad (also 128-aligned).
    Bias is pre-summed: b = b_i + b_h -> (1, N_pad), kept in f32.
    """
    hc, ic = w_i.shape
    hc_pad = _round_up(hc, 128)
    ic_pad = _round_up(ic, 128)
    N_pad = hc_pad
    K_pad = hc_pad + ic_pad

    w_h_t = jnp.pad(jnp.transpose(w_h), ((0, hc_pad - hc), (0, N_pad - hc)))
    w_i_t = jnp.pad(jnp.transpose(w_i), ((0, ic_pad - ic), (0, N_pad - hc)))
    w = jnp.concatenate([w_h_t, w_i_t], axis=0).astype(compute_dtype)
    b = jnp.pad((b_i + b_h).astype(jnp.float32).reshape(1, hc),
                ((0, 0), (0, N_pad - hc)))
    return {"w": w, "b": b, "ic": ic, "hc": hc,
            "ic_pad": ic_pad, "hc_pad": hc_pad,
            "K_pad": K_pad, "N_pad": N_pad,
            "compute_dtype": jnp.dtype(compute_dtype)}


def _batch_pad(B, compute_dtype):
    # 8 rows for f32, 16 for bf16 (32 for int8/fp8) -> full packed vregs.
    return _round_up(B, 32 // jnp.dtype(compute_dtype).itemsize)


# ----------------------------------------------------------------------------
# Single-step kernel (matches RNNCell.forward exactly)
# ----------------------------------------------------------------------------
def _rnn_cell_kernel(x_ref, h_ref, w_ref, b_ref, out_ref, xh_ref):
    B, ic = x_ref.shape
    hc = h_ref.shape[1]
    hc_pad = w_ref.shape[1]  # N_pad == hc_pad
    # Assemble [h | x] directly in VMEM (f32 scratch); padding stays zero.
    xh_ref[...] = jnp.zeros_like(xh_ref)
    xh_ref[0:B, 0:hc] = h_ref[...].astype(xh_ref.dtype)
    xh_ref[0:B, hc_pad:hc_pad + ic] = x_ref[...].astype(xh_ref.dtype)
    # One fused MXU pass; f32 accumulation; bias + tanh in f32 (VPU/EUP).
    acc = jnp.dot(xh_ref[...].astype(w_ref.dtype), w_ref[...],
                  preferred_element_type=jnp.float32)
    out_ref[...] = jnp.tanh(acc + b_ref[...]).astype(out_ref.dtype)


def rnn_cell(x, h, params):
    """Single RNNCell step: x (B, ic), h (B, hc) -> h' (B, hc)."""
    B = x.shape[0]
    ic, hc = params["ic"], params["hc"]
    K_pad, N_pad = params["K_pad"], params["N_pad"]
    cdt = params["compute_dtype"]
    B_pad = _batch_pad(B, cdt)
    w, b = params["w"], params["b"]

    # grid=() -> nothing is double-buffered: single-buffer footprint.
    vmem_needed = (w.size * cdt.itemsize + b.size * 4
                   + (x.size + h.size) * x.dtype.itemsize
                   + B_pad * N_pad * 4          # output block
                   + B_pad * K_pad * 4)         # f32 xh scratch
    cp_kwargs = {}
    if vmem_needed > 32 * 1024 * 1024:
        cp_kwargs["vmem_limit_bytes"] = _vmem_cap(vmem_needed)
    compiler_params = pltpu.CompilerParams(**cp_kwargs) if cp_kwargs else None

    cost = pl.CostEstimate(flops=2 * B_pad * K_pad * N_pad,
                           transcendentals=B_pad * N_pad,
                           bytes_accessed=int(vmem_needed))

    out = pl.pallas_call(
        _rnn_cell_kernel,
        out_shape=jax.ShapeDtypeStruct((B_pad, N_pad), jnp.float32),
        grid_spec=pltpu.PrefetchScalarGridSpec(
            num_scalar_prefetch=0,
            grid=(),
            in_specs=[
                pl.BlockSpec((B, ic), lambda: (0, 0)),         # x (full dims)
                pl.BlockSpec((B, hc), lambda: (0, 0)),         # h (full dims)
                pl.BlockSpec((K_pad, N_pad), lambda: (0, 0)),  # fused weight
                pl.BlockSpec((1, N_pad), lambda: (0, 0)),      # pre-summed bias
            ],
            out_specs=pl.BlockSpec((B_pad, N_pad), lambda: (0, 0)),
            scratch_shapes=[pltpu.VMEM((B_pad, K_pad), jnp.float32)],
        ),
        cost_estimate=cost,
        compiler_params=compiler_params,
    )(x, h, w, b)
    return out[:B, :hc].astype(x.dtype)


# ----------------------------------------------------------------------------
# In-kernel timestep loop: weights VMEM-resident, h carried in scratch
# ----------------------------------------------------------------------------
def _rnn_seq_kernel(x_ref, h0_ref, w_ref, b_ref, out_ref, xh_ref):
    t = pl.program_id(0)
    B, hc = h0_ref.shape
    ic = x_ref.shape[2]
    hc_pad = w_ref.shape[1]  # N_pad == hc_pad

    @pl.when(t == 0)
    def _():
        xh_ref[...] = jnp.zeros_like(xh_ref)
        xh_ref[0:B, 0:hc] = h0_ref[...].astype(xh_ref.dtype)

    # Stream x[t] into its 128-aligned slot of the persistent xh scratch.
    xh_ref[0:B, hc_pad:hc_pad + ic] = x_ref[0].astype(xh_ref.dtype)

    acc = jnp.dot(xh_ref[...].astype(w_ref.dtype), w_ref[...],
                  preferred_element_type=jnp.float32)
    h_new = jnp.tanh(acc + b_ref[...])           # (B_pad, N_pad) f32
    out_ref[0] = h_new.astype(out_ref.dtype)
    # Recurrent write-back: full-lane, offset-0, unmasked (h block is first).
    xh_ref[:, 0:hc_pad] = h_new


def rnn_cell_sequence(x_seq, h0, params):
    """Apply the RNNCell over a whole sequence inside ONE kernel.

    x_seq: (T, B, ic), h0: (B, hc) -> all hidden states (T, B, hc).
    Equivalent to looping RNNCell.forward over t.
    """
    T, B, _ = x_seq.shape
    ic, hc = params["ic"], params["hc"]
    K_pad, N_pad = params["K_pad"], params["N_pad"]
    cdt = params["compute_dtype"]
    B_pad = _batch_pad(B, cdt)
    w, b = params["w"], params["b"]

    w_bytes = w.size * cdt.itemsize
    # Weight / bias / h0 have constant index_maps (fetched once); only the
    # streamed x block and the output block are double-buffered.
    vmem_needed = (w_bytes + b.size * 4 + h0.size * h0.dtype.itemsize
                   + 2 * (B * ic * x_seq.dtype.itemsize)
                   + 2 * (B_pad * N_pad * 4)
                   + B_pad * K_pad * 4)
    cp_kwargs = {"dimension_semantics": ("arbitrary",)}  # sequential recurrence
    if vmem_needed > 32 * 1024 * 1024:
        cp_kwargs["vmem_limit_bytes"] = _vmem_cap(vmem_needed)

    cost = pl.CostEstimate(
        flops=2 * T * B_pad * K_pad * N_pad,
        transcendentals=T * B_pad * N_pad,
        bytes_accessed=int(w_bytes + b.size * 4
                           + x_seq.size * x_seq.dtype.itemsize
                           + h0.size * h0.dtype.itemsize
                           + T * B_pad * N_pad * 4))

    out = pl.pallas_call(
        _rnn_seq_kernel,
        out_shape=jax.ShapeDtypeStruct((T, B_pad, N_pad), jnp.float32),
        grid_spec=pltpu.PrefetchScalarGridSpec(
            num_scalar_prefetch=0,
            grid=(T,),
            in_specs=[
                pl.BlockSpec((1, B, ic), lambda t: (t, 0, 0)),    # x[t] streamed
                pl.BlockSpec((B, hc), lambda t: (0, 0)),          # h0 (once)
                pl.BlockSpec((K_pad, N_pad), lambda t: (0, 0)),   # weight resident
                pl.BlockSpec((1, N_pad), lambda t: (0, 0)),       # bias resident
            ],
            out_specs=pl.BlockSpec((1, B_pad, N_pad), lambda t: (t, 0, 0)),
            scratch_shapes=[pltpu.VMEM((B_pad, K_pad), jnp.float32)],
        ),
        cost_estimate=cost,
        compiler_params=pltpu.CompilerParams(**cp_kwargs),
    )(x_seq, h0, w, b)
    return out[:, :B, :hc].astype(x_seq.dtype)


# ----------------------------------------------------------------------------
# Demo / correctness checks
# ----------------------------------------------------------------------------
def xavier_normal(key, shape):
    # PyTorch xavier_normal_ on an (out, in) Linear weight: std = sqrt(2/(in+out))
    fan_out, fan_in = shape
    std = (2.0 / (fan_in + fan_out)) ** 0.5
    return std * jax.random.normal(key, shape, dtype=jnp.float32)


if __name__ == "__main__":
    B, ic, hc, T = 2, 4, 32, 8

    key = jax.random.PRNGKey(0)
    k_x, k_h, k_wi, k_wh, k_seq = jax.random.split(key, 5)

    x = jax.random.normal(k_x, (B, ic), dtype=jnp.float32)
    h = jax.random.normal(k_h, (B, hc), dtype=jnp.float32)
    x_seq = jax.random.normal(k_seq, (T, B, ic), dtype=jnp.float32)

    # Deterministic parameter init matching the module's __init__.
    w_i = xavier_normal(k_wi, (hc, ic))          # linear_i.weight
    b_i = jnp.zeros((hc,), dtype=jnp.float32)    # linear_i.bias (filled with 0)
    w_h = xavier_normal(k_wh, (hc, hc))          # linear_h.weight
    b_h = jnp.zeros((hc,), dtype=jnp.float32)    # linear_h.bias (filled with 0)

    # Pure-JAX references.
    def ref_step(x_t, h_t):
        return jnp.tanh(x_t @ w_i.T + b_i + h_t @ w_h.T + b_h)

    ref = ref_step(x, h)

    def scan_step(h_t, x_t):
        h_n = ref_step(x_t, h_t)
        return h_n, h_n

    _, ref_seq = jax.lax.scan(scan_step, h, x_seq)

    # f32 path (tight correctness check).
    params_f32 = prepare_rnn_cell_params(w_i, b_i, w_h, b_h,
                                         compute_dtype=jnp.float32)
    out_f32 = jax.block_until_ready(rnn_cell(x, h, params_f32))
    assert out_f32.shape == (B, hc)
    assert jnp.allclose(out_f32, ref, atol=1e-5), "f32 single-step mismatch"

    seq_f32 = jax.block_until_ready(rnn_cell_sequence(x_seq, h, params_f32))
    assert seq_f32.shape == (T, B, hc)
    assert jnp.allclose(seq_f32, ref_seq, atol=1e-4), "f32 sequence mismatch"

    # Default bf16 matmul-input path (relative-error check; x/h are rounded to
    # bf16 at the MXU input only — accumulation, bias and tanh stay f32).
    params_bf16 = prepare_rnn_cell_params(w_i, b_i, w_h, b_h)
    out_bf16 = jax.block_until_ready(rnn_cell(x, h, params_bf16))
    rel = jnp.max(jnp.abs(out_bf16 - ref)) / (jnp.max(jnp.abs(ref)) + 1e-6)
    assert out_bf16.shape == (B, hc), "bf16 single-step shape mismatch"
    assert rel < 3e-2, f"bf16 single-step relative error too high: {rel}"

    seq_bf16 = jax.block_until_ready(rnn_cell_sequence(x_seq, h, params_bf16))
    rel_s = (jnp.max(jnp.abs(seq_bf16 - ref_seq))
             / (jnp.max(jnp.abs(ref_seq)) + 1e-6))
    assert seq_bf16.shape == (T, B, hc), "bf16 sequence shape mismatch"
    assert rel_s < 5e-2, f"bf16 sequence relative error too high: {rel_s}"

    print("KERNEL_OK")
</pallas_src>

<mosaic_0001>
module attributes {stable_mosaic.version = 11 : i64} {
  func.func @_rnn_cell_kernel(%arg0: memref<2x4xf32, #tpu.memory_space<vmem>>, %arg1: memref<2x32xf32, #tpu.memory_space<vmem>>, %arg2: memref<256x128xf32, #tpu.memory_space<vmem>>, %arg3: memref<1x128xf32, #tpu.memory_space<vmem>>, %arg4: memref<8x128xf32, #tpu.memory_space<vmem>>, %arg5: memref<8x256xf32, #tpu.memory_space<vmem>>) attributes {dimension_semantics = [], scalar_prefetch = 0 : i64, scratch_operands = 1 : i64, tpu.core_type = #tpu.core_type<tc>} {
    %cst = arith.constant 0.000000e+00 : f32
    %0 = vector.broadcast %cst : f32 to vector<8x256xf32>
    %c0 = arith.constant 0 : index
    %c0_0 = arith.constant 0 : index
    %1 = vector.load %arg5[%c0, %c0_0] : memref<8x256xf32, #tpu.memory_space<vmem>>, vector<8x256xf32>
    tpu.vector_store %arg5[%c0, %c0_0], %0 {strides = array<i32>} : memref<8x256xf32, #tpu.memory_space<vmem>>, vector<8x256xf32>,
    %c0_1 = arith.constant 0 : index
    %c0_2 = arith.constant 0 : index
    %2 = vector.load %arg1[%c0_1, %c0_2] : memref<2x32xf32, #tpu.memory_space<vmem>>, vector<2x32xf32>
    %c0_3 = arith.constant 0 : index
    %c0_4 = arith.constant 0 : index
    %3 = vector.load %arg5[%c0_3, %c0_4] : memref<8x256xf32, #tpu.memory_space<vmem>>, vector<2x32xf32>
    tpu.vector_store %arg5[%c0_3, %c0_4], %2 {strides = array<i32>} : memref<8x256xf32, #tpu.memory_space<vmem>>, vector<2x32xf32>,
    %c0_5 = arith.constant 0 : index
    %c0_6 = arith.constant 0 : index
    %4 = vector.load %arg0[%c0_5, %c0_6] : memref<2x4xf32, #tpu.memory_space<vmem>>, vector<2x4xf32>
    %c0_7 = arith.constant 0 : index
    %c128 = arith.constant 128 : index
    %5 = vector.load %arg5[%c0_7, %c128] : memref<8x256xf32, #tpu.memory_space<vmem>>, vector<2x4xf32>
    tpu.vector_store %arg5[%c0_7, %c128], %4 {strides = array<i32>} : memref<8x256xf32, #tpu.memory_space<vmem>>, vector<2x4xf32>,
    %c0_8 = arith.constant 0 : index
    %c0_9 = arith.constant 0 : index
    %6 = vector.load %arg5[%c0_8, %c0_9] : memref<8x256xf32, #tpu.memory_space<vmem>>, vector<8x256xf32>
    %c0_10 = arith.constant 0 : index
    %c0_11 = arith.constant 0 : index
    %7 = vector.load %arg2[%c0_10, %c0_11] : memref<256x128xf32, #tpu.memory_space<vmem>>, vector<256x128xf32>
    %cst_12 = arith.constant dense<0.000000e+00> : vector<8x128xf32>
    %8 = tpu.matmul %6, %7, %cst_12 {dimension_numbers = #tpu.dot_dimension_numbers<[1], [0], [0], [1], [0, 0, 1, 1], [], []>} : vector<8x256xf32>, vector<256x128xf32>, vector<8x128xf32> -> vector<8x128xf32>
    %c0_13 = arith.constant 0 : index
    %c0_14 = arith.constant 0 : index
    %9 = vector.load %arg3[%c0_13, %c0_14] : memref<1x128xf32, #tpu.memory_space<vmem>>, vector<1x128xf32>
    %10 = vector.broadcast %9 : vector<1x128xf32> to vector<8x128xf32>
    %11 = arith.addf %8, %10 : vector<8x128xf32>
    %12 = math.tanh %11 : vector<8x128xf32>
    %c0_15 = arith.constant 0 : index
    %c0_16 = arith.constant 0 : index
    %13 = vector.load %arg4[%c0_15, %c0_16] : memref<8x128xf32, #tpu.memory_space<vmem>>, vector<8x128xf32>
    tpu.vector_store %arg4[%c0_15, %c0_16], %12 {strides = array<i32>} : memref<8x128xf32, #tpu.memory_space<vmem>>, vector<8x128xf32>,
    return
  }
}

</mosaic_0001>

<bundles_post_ra>
// kernel: tpu_custom_call.1
= control target key start
LH: loop header
LB: loop body
LE: loop exit
PB: predicated region body
PF: predicated region fallthrough
CT: control target
= control target key end

     0   :  { %9 = vsyncpa [#allocation4], 0  ;;  %s409_s0 = inlined_call_operand.hbm [shape: f32[2,4], index: 0, kind: input, shape index: {}]   ;;  %s410_s1 = inlined_call_operand.vmem [shape: f32[2,32], index: 1, kind: input, shape index: {}]   ;;  %s411_s2 = inlined_call_operand.hbm [shape: f32[256,128], index: 2, kind: input, shape index: {}]   ;;  %s412_s3 = inlined_call_operand.vmem [shape: f32[1,128], index: 3, kind: input, shape index: {}]   ;;  %s413_s4 = inlined_call_operand.hbm [shape: f32[8,128], index: 4, kind: output, shape index: {}]  }
   0x1   :  { %10 = vsyncpa [#allocation7], 0 }
   0x2   :  { %11 = vsyncpa [#allocation5], 0  ;;  %s329_s15 = smov [#allocation3]   ;;  %s330_s17 = smov [#allocation6]  }
   0x3   :  { %s18_s16 = sshll.u32 %s329_s15, 4  ;;  %s29_s18 = sshll.u32 %s330_s17, 4  ;;  %s19_s16 = int_to_ptr.vmem [resolvable:$true] %s18_s16  ;;  %s360_s18 = int_to_ptr.vmem [resolvable:$true] %s29_s18 }
   0x4   :  { %s257_s21 = scalar_lea.hbm %s409_s0, 32 }
   0x5   :  { %p258_p0 = scmp.ne.s32.totalorder %s409_s0, %s257_s21  ;;  %p261_p1 = scmp.lt.u32.totalorder %s257_s21, %s409_s0 }
   0x7   :  { %p263_p2 = pnand %p261_p1, %p258_p0 }
   0x9   :  { %266 = shalt.err (!%p263_p2)
}
   0xa   :  { %s267_s26 = scalar_lea.vmem %s19_s16, 32  ;;  %p272_p4 = scmp.lt.s32.totalorder %s19_s16, %s19_s16 }
   0xb   :  { %p268_p3 = scmp.ne.s32.totalorder %s19_s16, %s267_s26  ;;  %p273_p5 = scmp.lt.s32.totalorder %s267_s26, %s267_s26 }
   0xd   :  { %p274_p6 = por %p273_p5, %p272_p4 }
   0xf   :  { %p275_p7 = pnand %p274_p6, %p268_p3 }
  0x11   :  { %278 = shalt.err (!%p275_p7)
}
  0x12   :  { %21 = dma.hbm_to_vmem [thread:$0]  %s409_s0, 32, %s19_s16, [#allocation4]  }
  0x13   :  { %s279_s5 = scalar_lea.hbm %s411_s2, 4096 }
  0x14   :  { %p280_p8 = scmp.ne.s32.totalorder %s411_s2, %s279_s5  ;;  %p283_p9 = scmp.lt.u32.totalorder %s279_s5, %s411_s2 }
  0x16   :  { %p285_p10 = pnand %p283_p9, %p280_p8 }
  0x18   :  { %288 = shalt.err (!%p285_p10)
}
  0x19   :  { %s289_s10 = scalar_lea.vmem %s360_s18, 4096  ;;  %p294_p12 = scmp.lt.s32.totalorder %s360_s18, %s360_s18 }
  0x1a   :  { %p290_p11 = scmp.ne.s32.totalorder %s360_s18, %s289_s10  ;;  %p295_p13 = scmp.lt.s32.totalorder %s289_s10, %s289_s10 }
  0x1c   :  { %p296_p0 = por %p295_p13, %p294_p12 }
  0x1e   :  { %p297_p1 = pnand %p296_p0, %p290_p11 }
  0x20   :  { %300 = shalt.err (!%p297_p1)
}
  0x21   :  { %s331_s0 = smov 128   ;;  %s332_s11 = smov 8  }
  0x22   :  { %35 = dma.hbm_to_vmem [thread:$0]  %s411_s2, 4096, %s360_s18, [#allocation7], %s331_s0, %s331_s0, %s332_s11  }
  0x23   :  { %323 = dma.done.wait [#allocation4], 32  }
  0x24   :  { %324 = vsyncadd [#allocation4], 4294967264 }
  0x25   :  { %325 = dma.done.wait [#allocation7], 4096  }
  0x26   :  { %326 = vsyncadd [#allocation7], 4294963200  ;;  %v333_v0 = vmov 0.0   ;;  %v70_v1 = vld [vmem:[#allocation6 + $0x80] sm:$0xff]  ;;  %v71_v2 = vld [vmem:[#allocation6 + $0x88] sm:$0xff]  ;;  %vm50_vm0 = vcmask 25600  }
  0x27   :  { %45 = vst [vmem:[#allocation2 + $0x8] sm:$0xff] %v333_v0  ;;  %44 = vst [vmem:[#allocation2] sm:$0xff] %v333_v0  ;;  %v54_v3 = vld [vmem:[#allocation6] sm:$0xff]  ;;  %v217_v4 = vpack.c.bf16 %v71_v2, %v70_v1  ;;  %v55_v5 = vld [vmem:[#allocation6 + $0x8] sm:$0xff]  ;;  %vm47_vm1 = vcmask 254976   ;;  %s334_s16 = smov [#allocation8]  }
  0x28   :  { %v72_v6 = vld [vmem:[#allocation6 + $0x90] sm:$0xff]  ;;  %v73_v7 = vld [vmem:[#allocation6 + $0x98] sm:$0xff]  ;;  %v219_v8 = vpack.c.bf16 %v55_v5, %v54_v3  ;;  %v74_v12 = vld [vmem:[#allocation6 + $0xa0] sm:$0xff]  ;;  %s171_s17 = sshll.u32 %s334_s16, 4  ;;  %s172_s17 = int_to_ptr.vmem [resolvable:$true] %s171_s17 }
  0x29   :  { %v221_v9 = vpack.c.bf16 %v73_v7, %v72_v6  ;;  %v56_v10 = vld [vmem:[#allocation6 + $0x10] sm:$0xff]  ;;  %v57_v11 = vld [vmem:[#allocation6 + $0x18] sm:$0xff]  ;;  %218 = vmatprep.subr.bf16.mxu0 %v217_v4  ;;  %v75_v13 = vld [vmem:[#allocation6 + $0xa8] sm:$0xff]  ;;  %s301_s18 = scalar_lea.vmem %s172_s17, 128  ;;  %p306_p3 = scmp.lt.s32.totalorder %s172_s17, %s172_s17 }
  0x2a   :  { %220 = vmatpush3.bf16.msra.mxu0 %v219_v8  ;;  %v223_v14 = vpack.c.bf16 %v57_v11, %v56_v10  ;;  %v225_v15 = vpack.c.bf16 %v75_v13, %v74_v12  ;;  %v58_v16 = vld [vmem:[#allocation6 + $0x20] sm:$0xff]  ;;  %v59_v17 = vld [vmem:[#allocation6 + $0x28] sm:$0xff]  ;;  %v76_v18 = vld [vmem:[#allocation6 + $0xb0] sm:$0xff]  ;;  %p302_p2 = scmp.ne.s32.totalorder %s172_s17, %s301_s18  ;;  %p307_p4 = scmp.lt.s32.totalorder %s301_s18, %s301_s18 }
  0x2b   :  { %222 = vmatprep.subr.bf16.mxu0 %v221_v9  ;;  %v77_v19 = vld [vmem:[#allocation6 + $0xb8] sm:$0xff]  ;;  %v227_v20 = vpack.c.bf16 %v59_v17, %v58_v16  ;;  %v60_v22 = vld [vmem:[#allocation6 + $0x30] sm:$0xff]  ;;  %v78_v24 = vld [vmem:[#allocation6 + $0xc0] sm:$0xff] }
  0x2c   :  { %v229_v21 = vpack.c.bf16 %v77_v19, %v76_v18  ;;  %v61_v23 = vld [vmem:[#allocation6 + $0x38] sm:$0xff]  ;;  %v79_v25 = vld [vmem:[#allocation6 + $0xc8] sm:$0xff]  ;;  %v62_v30 = vld [vmem:[#allocation6 + $0x40] sm:$0xff]  ;;  %p308_p5 = por %p307_p4, %p306_p3 }
  0x2d   :  { %v49_v26 = vld [vmem:[#allocation3] sm:$0x3]  ;;  %v46_v27 = vld [vmem:[%s410_s1] sm:$0x3]  ;;  %v231_v28 = vpack.c.bf16 %v61_v23, %v60_v22  ;;  %v233_v29 = vpack.c.bf16 %v79_v25, %v78_v24  ;;  %v80_v32 = vld [vmem:[#allocation6 + $0xd0] sm:$0xff] }
  0x2e   :  { %224 = vmatpush3.bf16.msra.mxu0 %v223_v14  ;;  %51 = vst.msk [vmem:[#allocation2 + $0x8] sm:$0x3] %vm50_vm0, %v49_v26  ;;  %v63_v31 = vld [vmem:[#allocation6 + $0x48] sm:$0xff]  ;;  %v81_v33 = vld [vmem:[#allocation6 + $0xd8] sm:$0xff]  ;;  %v64_v36 = vld [vmem:[#allocation6 + $0x50] sm:$0xff]  ;;  %p309_p6 = pnand %p308_p5, %p302_p2 }
  0x2f   :  { %226 = vmatprep.subr.bf16.mxu0 %v225_v15  ;;  %48 = vst.msk [vmem:[#allocation2] sm:$0x3] %vm47_vm1, %v46_v27  ;;  %v235_v34 = vpack.c.bf16 %v63_v31, %v62_v30  ;;  %v237_v35 = vpack.c.bf16 %v81_v33, %v80_v32  ;;  %v65_v37 = vld [vmem:[#allocation6 + $0x58] sm:$0xff]  ;;  %v82_v38 = vld [vmem:[#allocation6 + $0xe0] sm:$0xff]  ;;  %v83_v39 = vld [vmem:[#allocation6 + $0xe8] sm:$0xff] }
  0x30   :  { %v239_v41 = vpack.c.bf16 %v65_v37, %v64_v36  ;;  %v241_v42 = vpack.c.bf16 %v83_v39, %v82_v38  ;;  %v66_v43 = vld [vmem:[#allocation6 + $0x60] sm:$0xff]  ;;  %v67_v44 = vld [vmem:[#allocation6 + $0x68] sm:$0xff]  ;;  %v84_v45 = vld [vmem:[#allocation6 + $0xf0] sm:$0xff] }
  0x31   :  { %v85_v46 = vld [vmem:[#allocation6 + $0xf8] sm:$0xff]  ;;  %v243_v47 = vpack.c.bf16 %v67_v44, %v66_v43  ;;  %v68_v49 = vld [vmem:[#allocation6 + $0x70] sm:$0xff]  ;;  %v181_v54 = vld [vmem:[%s412_s3] ss:$0 sm:$0xff] }
  0x32   :  { %228 = vmatpush3.bf16.msra.mxu0 %v227_v20  ;;  %v245_v48 = vpack.c.bf16 %v85_v46, %v84_v45  ;;  %v69_v50 = vld [vmem:[#allocation6 + $0x78] sm:$0xff] }
  0x33   :  { %230 = vmatprep.subr.bf16.mxu0 %v229_v21  ;;  %v247_v51 = vpack.c.bf16 %v69_v50, %v68_v49 }
  0x35   :  { %v53_v40 = vld [vmem:[#allocation2 + $0x8] sm:$0xff] }
  0x36   :  { %232 = vmatpush3.bf16.msra.mxu0 %v231_v28  ;;  %157 = vmatprep.mubr.f32.mxu0 %v53_v40  ;;  %v52_v52 = vld [vmem:[#allocation2] sm:$0xff] }
  0x37   :  { %234 = vmatprep.subr.bf16.mxu0 %v233_v29 }
  0x3a   :  { %236 = vmatpush3.bf16.msra.mxu0 %v235_v34 }
  0x3b   :  { %238 = vmatprep.subr.bf16.mxu0 %v237_v35 }
  0x3e   :  { %240 = vmatpush3.bf16.msra.mxu0 %v239_v41 }
  0x3f   :  { %242 = vmatprep.subr.bf16.mxu0 %v241_v42 }
  0x42   :  { %244 = vmatpush3.bf16.msra.mxu0 %v243_v47 }
  0x43   :  { %246 = vmatprep.subr.bf16.mxu0 %v245_v48 }
  0x46   :  { %248 = vmatpush3.bf16.msra.mxu0 %v247_v51 }
  0x49   :  { %158 = vmatmul.mubr.f32.vlgmr.msra.gmra.mrb[0].mxu0 %v52_v52 }
 0x11c   :  { %v214_v53 = vpop.f32.mrb[0].mxu0 }
 0x11d   :  { %v215_v55 = vpop.f32.mrb[1].mxu0 }
 0x11e   :  { %v216_v56 = vadd.f32 %v215_v55, %v214_v53 }
 0x120   :  { %v160_v57 = vadd.f32 %v216_v56, %v181_v54 }
 0x122   :  { %255 = vtanh.f32 %v160_v57 }
 0x12c   :  { %v256_v58 = vpop.eup %255 }
 0x12d   :  { %164 = vst [vmem:[#allocation8] sm:$0xff] %v256_v58 }
 0x12e   :  { %312 = shalt.err (!%p309_p6)
}
 0x12f   :  { %s313_s3 = scalar_lea.hbm %s413_s4, 128 }
 0x130   :  { %p314_p7 = scmp.ne.s32.totalorder %s413_s4, %s313_s3  ;;  %p317_p8 = scmp.lt.u32.totalorder %s313_s3, %s413_s4 }
 0x132   :  { %p319_p9 = pnand %p317_p8, %p314_p7 }
 0x134   :  { %322 = shalt.err (!%p319_p9)
}
 0x135   :  { %174 = dma.vmem_to_hbm [thread:$0]  %s172_s17, 128, %s413_s4, [#allocation5]  }
 0x136   :  { %327 = dma.done.wait [#allocation5], 128  }
 0x137   :  { %328 = vsyncadd [#allocation5], 4294967168 }
 0x138   :  { %178 = vsyncpa [#allocation4], 1 }
 0x139   :  { %179 = vsyncpa [#allocation7], 1 }
 0x13a   :  { %180 = vsyncpa [#allocation5], 1 }

</bundles_post_ra>
